<compile_context>
chip_gen: v7x
topology: tpu7x:2x2x1
jax: 0.10.0
libtpu: 0.0.40
codegen_flags: <defaults>
</compile_context>

<pallas_src>
import math
from functools import partial

import numpy as np
import jax
import jax.numpy as jnp
from jax import lax
from jax.experimental import pallas as pl
from jax.experimental.pallas import tpu as pltpu


# --------------------------------------------------------------------------
# Kernels
# --------------------------------------------------------------------------
def _node_proj_kernel(x_ref, w_in_ref, w_ns_ref, hv_ref, hs_ref, *, d_out):
    """h = ReLU(x @ W_in); [hv | h_self] = h @ [W_node | W_self] (fused)."""
    h = jnp.dot(x_ref[...], w_in_ref[...], preferred_element_type=jnp.float32)
    h = jnp.maximum(h, 0.0).astype(w_ns_ref.dtype)
    hv_hs = jnp.dot(h, w_ns_ref[...], preferred_element_type=jnp.float32)
    hv_ref[...] = hv_hs[:, :d_out].astype(hv_ref.dtype)
    hs_ref[...] = hv_hs[:, d_out:].astype(hs_ref.dtype)


def _edge_readout_kernel(src_ref, dst_ref, e_ref, hv_ref, hs_ref, w_edge_ref,
                         out_ref):
    """Per (feature-block f, edge-tile t):
         he       = e @ W_edge[:, f]
         gathered = onehot(src) @ hv[:, f]          (row gather via MXU)
         out[:,f] += onehot(dst)^T @ (gathered*he)  (scatter-add via MXU)
       last t: out[:, f] *= h_self[:, f]."""
    t = pl.program_id(1)                      # edge-tile axis (reduction, last)

    @pl.when(t == 0)
    def _():
        out_ref[...] = jnp.zeros_like(out_ref)

    te = e_ref.shape[0]
    v_pad = hv_ref.shape[0]
    cdt = hv_ref.dtype                        # compute dtype (bf16 or f32)

    # Edge-feature projection for this tile (MXU, f32 accumulate).
    he = jnp.dot(e_ref[...], w_edge_ref[...], preferred_element_type=jnp.float32)

    # In-kernel one-hot matrices from iota compares (never hit HBM).
    node_iota = lax.broadcasted_iota(jnp.int32, (te, v_pad), 1)
    p_src = (src_ref[...] == node_iota).astype(cdt)      # (te, V)
    p_dst = (dst_ref[...] == node_iota).astype(cdt)      # (te, V)

    gathered = jnp.dot(p_src, hv_ref[...],
                       preferred_element_type=jnp.float32)          # hv[src]
    m = (gathered * he).astype(cdt)                                  # (te, df)

    # Scatter-add by destination: out += P_dst^T @ m (contract the edge axis).
    out_ref[...] += lax.dot_general(
        p_dst, m, dimension_numbers=(((0,), (0,)), ((), ())),
        preferred_element_type=jnp.float32)

    @pl.when(t == pl.num_programs(1) - 1)
    def _():
        out_ref[...] = out_ref[...] * hs_ref[...].astype(jnp.float32)


# --------------------------------------------------------------------------
# Helpers
# --------------------------------------------------------------------------
def _round_up(x, m):
    return ((x + m - 1) // m) * m


def _pad_to(a, axis, target):
    pad = target - a.shape[axis]
    if pad <= 0:
        return a
    widths = [(0, 0)] * a.ndim
    widths[axis] = (0, pad)
    return jnp.pad(a, widths)


# --------------------------------------------------------------------------
# Parameter init (matches WLNLinear.reset_parameters, deterministic)
# --------------------------------------------------------------------------
def _wln_linear_params(key, in_feats, out_feats, bias=True):
    kw, kb = jax.random.split(key)
    stddev = min(1.0 / math.sqrt(in_feats), 0.1)
    w = stddev * jax.random.normal(kw, (out_feats, in_feats), jnp.float32)
    params = {"w": jnp.transpose(w)}  # stored (in, out) for the kernels
    if bias:
        bound = 1.0 / math.sqrt(in_feats)  # fan_in == in_feats
        params["b"] = jax.random.uniform(
            kb, (1, out_feats), jnp.float32, -bound, bound)
    return params


def init_wln(key, node_in_feats, edge_in_feats, node_out_feats=300, n_layers=3):
    keys = jax.random.split(key, 6)
    return {
        "proj_node_in": _wln_linear_params(keys[0], node_in_feats, node_out_feats, bias=False),
        # proj_cat_msg / get_new_node are initialized for parity with the
        # module, but the reference forward never lets them reach the output.
        "proj_cat_msg": _wln_linear_params(keys[1], edge_in_feats + node_out_feats, node_out_feats, bias=True),
        "get_new_node": _wln_linear_params(keys[2], 2 * node_out_feats, node_out_feats, bias=True),
        "proj_edge_msg": _wln_linear_params(keys[3], edge_in_feats, node_out_feats, bias=False),
        "proj_node_msg": _wln_linear_params(keys[4], node_out_feats, node_out_feats, bias=False),
        "proj_self": _wln_linear_params(keys[5], node_out_feats, node_out_feats, bias=False),
        "n_layers": n_layers,
        "node_out_feats": node_out_feats,
    }


# --------------------------------------------------------------------------
# WLN forward (same output as the given PyTorch forward)
# --------------------------------------------------------------------------
def wln_forward(params, src, dst, node_feats, edge_feats, *,
                node_tile=512, edge_tile=1024, feat_tile=128,
                compute_dtype=jnp.bfloat16,
                vmem_limit_bytes=48 * 1024 * 1024):
    V, node_in = node_feats.shape
    E, edge_in = edge_feats.shape
    D = params["node_out_feats"]
    D_pad = _round_up(D, 128)                    # lane-dense feature dim

    # Weights (stored (in, out)): pad feature dims to 128 lanes and fuse
    # W_node / W_self into one (D_pad, 2*D_pad) matmul.
    w_in = _pad_to(params["proj_node_in"]["w"], 1, D_pad).astype(compute_dtype)
    w_node = _pad_to(_pad_to(params["proj_node_msg"]["w"], 0, D_pad), 1, D_pad)
    w_self = _pad_to(_pad_to(params["proj_self"]["w"], 0, D_pad), 1, D_pad)
    w_ns = jnp.concatenate([w_node, w_self], axis=1).astype(compute_dtype)
    w_edge = _pad_to(params["proj_edge_msg"]["w"], 1, D_pad).astype(compute_dtype)

    # Row/edge padding to tile multiples (padded rows/edges are zeros -> no-op).
    tv = min(node_tile, _round_up(V, 8))
    V_pad = _round_up(V, tv)
    te = min(edge_tile, _round_up(E, 8))
    E_pad = _round_up(E, te)
    df = min(feat_tile, D_pad)                   # 128-lane feature blocks

    x = _pad_to(node_feats, 0, V_pad).astype(compute_dtype)
    e = _pad_to(edge_feats, 0, E_pad).astype(compute_dtype)
    src_p = _pad_to(src.astype(jnp.int32).reshape(-1, 1), 0, E_pad)
    dst_p = _pad_to(dst.astype(jnp.int32).reshape(-1, 1), 0, E_pad)

    # --- Fused node projection: h = ReLU(x W_in); hv = h W_node; hs = h W_self
    hv, h_self = pl.pallas_call(
        partial(_node_proj_kernel, d_out=D_pad),
        out_shape=(jax.ShapeDtypeStruct((V_pad, D_pad), compute_dtype),
                   jax.ShapeDtypeStruct((V_pad, D_pad), compute_dtype)),
        grid=(V_pad // tv,),
        in_specs=[
            pl.BlockSpec((tv, node_in), lambda i: (i, 0)),
            pl.BlockSpec((node_in, D_pad), lambda i: (0, 0)),
            pl.BlockSpec((D_pad, 2 * D_pad), lambda i: (0, 0)),
        ],
        out_specs=(
            pl.BlockSpec((tv, D_pad), lambda i: (i, 0)),
            pl.BlockSpec((tv, D_pad), lambda i: (i, 0)),
        ),
        compiler_params=pltpu.CompilerParams(
            dimension_semantics=("parallel",),
            vmem_limit_bytes=vmem_limit_bytes),
    )(x, w_in, w_ns)

    # TODO(synk): the n_layers message-passing loop of the reference forward
    # writes 'hv_new' only into a local_var graph and never updates node_feats,
    # so it cannot affect the returned value; it is dropped here (dead compute).

    # --- Edge readout: stream edge tiles (reduction axis, last), 128-lane
    #     feature blocks as a "parallel" axis; gather/scatter via in-kernel
    #     one-hot MXU matmuls; resident (V_pad, df) f32 accumulator.
    out = pl.pallas_call(
        _edge_readout_kernel,
        out_shape=jax.ShapeDtypeStruct((V_pad, D_pad), jnp.float32),
        grid=(D_pad // df, E_pad // te),
        in_specs=[
            pl.BlockSpec((te, 1), lambda f, t: (t, 0)),               # src
            pl.BlockSpec((te, 1), lambda f, t: (t, 0)),               # dst
            pl.BlockSpec((te, edge_in), lambda f, t: (t, 0),
                         pipeline_mode=pl.Buffered(3)),               # e
            pl.BlockSpec((V_pad, df), lambda f, t: (0, f)),           # hv
            pl.BlockSpec((V_pad, df), lambda f, t: (0, f)),           # h_self
            pl.BlockSpec((edge_in, df), lambda f, t: (0, f)),         # W_edge
        ],
        out_specs=pl.BlockSpec((V_pad, df), lambda f, t: (0, f)),
        compiler_params=pltpu.CompilerParams(
            dimension_semantics=("parallel", "arbitrary"),
            vmem_limit_bytes=vmem_limit_bytes),
    )(src_p, dst_p, e, hv, h_self, w_edge)

    return out[:V, :D]


# --------------------------------------------------------------------------
# Pure-numpy reference (float64) for a sanity check
# --------------------------------------------------------------------------
def wln_forward_ref(params, src, dst, node_feats, edge_feats, V):
    f64 = lambda a: np.asarray(a, dtype=np.float64)
    h = np.maximum(f64(node_feats) @ f64(params["proj_node_in"]["w"]), 0.0)
    hv = h @ f64(params["proj_node_msg"]["w"])
    he = f64(edge_feats) @ f64(params["proj_edge_msg"]["w"])
    m = hv[np.asarray(src)] * he
    h_nbr = np.zeros((V, h.shape[1]), dtype=np.float64)
    np.add.at(h_nbr, np.asarray(dst), m)
    h_self = h @ f64(params["proj_self"]["w"])
    return h_nbr * h_self


if __name__ == "__main__":
    key = jax.random.PRNGKey(0)
    k_param, k_node, k_edge, k_src, k_dst = jax.random.split(key, 5)

    # small, module-consistent shapes (module default node_out_feats=300
    # exercises the lane-padding path 300 -> 384)
    V, E = 16, 48
    node_in, edge_in, node_out, n_layers = 32, 16, 300, 3

    params = init_wln(k_param, node_in, edge_in, node_out, n_layers)
    node_feats = jax.random.normal(k_node, (V, node_in), jnp.float32)
    edge_feats = jax.random.normal(k_edge, (E, edge_in), jnp.float32)
    src = jax.random.randint(k_src, (E,), 0, V)
    dst = jax.random.randint(k_dst, (E,), 0, V)

    ref = wln_forward_ref(params, src, dst, node_feats, edge_feats, V)

    # f32 compute path: tight tolerance (validates kernel logic exactly).
    out_f32 = wln_forward(params, src, dst, node_feats, edge_feats,
                          compute_dtype=jnp.float32)
    out_f32 = jax.block_until_ready(out_f32)
    assert out_f32.shape == (V, node_out) and out_f32.dtype == jnp.float32
    np.testing.assert_allclose(np.asarray(out_f32), ref, rtol=2e-3, atol=2e-3)

    # bf16 default path (MXU-native, halved HBM traffic): looser tolerance
    # to account for bf16 rounding of activations / products.
    out_bf16 = wln_forward(params, src, dst, node_feats, edge_feats)
    out_bf16 = jax.block_until_ready(out_bf16)
    assert out_bf16.shape == (V, node_out) and out_bf16.dtype == jnp.float32
    np.testing.assert_allclose(np.asarray(out_bf16), ref, rtol=5e-2, atol=1e-2)

    print("KERNEL_OK")
</pallas_src>

<mosaic_0001>
module attributes {stable_mosaic.version = 11 : i64} {
  func.func @_node_proj_kernel(%arg0: i32, %arg1: memref<16x32xf32, #tpu.memory_space<vmem>>, %arg2: memref<32x384xf32, #tpu.memory_space<vmem>>, %arg3: memref<384x768xf32, #tpu.memory_space<vmem>>, %arg4: memref<16x384xf32, #tpu.memory_space<vmem>>, %arg5: memref<16x384xf32, #tpu.memory_space<vmem>>) attributes {dimension_semantics = [#tpu.dimension_semantics<parallel>], iteration_bounds = array<i64: 1>, scalar_prefetch = 0 : i64, scratch_operands = 0 : i64, tpu.core_type = #tpu.core_type<tc>, window_params = [{transform_indices = @transform_0, window_bounds = array<i64: 16, 32>}, {pipeline_mode = #tpu.pipeline_mode<synchronous>, transform_indices = @transform_1, window_bounds = array<i64: 32, 384>}, {pipeline_mode = #tpu.pipeline_mode<synchronous>, transform_indices = @transform_2, window_bounds = array<i64: 384, 768>}, {transform_indices = @transform_3, window_bounds = array<i64: 16, 384>}, {transform_indices = @transform_4, window_bounds = array<i64: 16, 384>}]} {
    %c0 = arith.constant 0 : index
    %c0_0 = arith.constant 0 : index
    %0 = vector.load %arg1[%c0, %c0_0] : memref<16x32xf32, #tpu.memory_space<vmem>>, vector<16x32xf32>
    %c0_1 = arith.constant 0 : index
    %c0_2 = arith.constant 0 : index
    %1 = vector.load %arg2[%c0_1, %c0_2] : memref<32x384xf32, #tpu.memory_space<vmem>>, vector<32x384xf32>
    %cst = arith.constant dense<0.000000e+00> : vector<16x384xf32>
    %2 = tpu.matmul %0, %1, %cst {dimension_numbers = #tpu.dot_dimension_numbers<[1], [0], [0], [1], [0, 0, 1, 1], [], []>} : vector<16x32xf32>, vector<32x384xf32>, vector<16x384xf32> -> vector<16x384xf32>
    %cst_3 = arith.constant 0.000000e+00 : f32
    %3 = vector.broadcast %cst_3 : f32 to vector<16x384xf32>
    %4 = arith.maximumf %2, %3 : vector<16x384xf32>
    %c0_4 = arith.constant 0 : index
    %c0_5 = arith.constant 0 : index
    %5 = vector.load %arg3[%c0_4, %c0_5] : memref<384x768xf32, #tpu.memory_space<vmem>>, vector<384x768xf32>
    %cst_6 = arith.constant dense<0.000000e+00> : vector<16x768xf32>
    %6 = tpu.matmul %4, %5, %cst_6 {dimension_numbers = #tpu.dot_dimension_numbers<[1], [0], [0], [1], [0, 0, 1, 1], [], []>} : vector<16x384xf32>, vector<384x768xf32>, vector<16x768xf32> -> vector<16x768xf32>
    %7 = vector.extract_strided_slice %6 {offsets = [0, 0], sizes = [16, 384], strides = [1, 1]} : vector<16x768xf32> to vector<16x384xf32>
    %c0_7 = arith.constant 0 : index
    %c0_8 = arith.constant 0 : index
    %8 = vector.load %arg4[%c0_7, %c0_8] : memref<16x384xf32, #tpu.memory_space<vmem>>, vector<16x384xf32>
    tpu.vector_store %arg4[%c0_7, %c0_8], %7 {strides = array<i32>} : memref<16x384xf32, #tpu.memory_space<vmem>>, vector<16x384xf32>,
    %9 = vector.extract_strided_slice %6 {offsets = [0, 384], sizes = [16, 384], strides = [1, 1]} : vector<16x768xf32> to vector<16x384xf32>
    %c0_9 = arith.constant 0 : index
    %c0_10 = arith.constant 0 : index
    %10 = vector.load %arg5[%c0_9, %c0_10] : memref<16x384xf32, #tpu.memory_space<vmem>>, vector<16x384xf32>
    tpu.vector_store %arg5[%c0_9, %c0_10], %9 {strides = array<i32>} : memref<16x384xf32, #tpu.memory_space<vmem>>, vector<16x384xf32>,
    return
  }
  func.func @transform_0(%arg0: i32) -> (i32, i32) {
    %c0_i32 = arith.constant 0 : i32
    %c0_i32_0 = arith.constant 0 : i32
    return %arg0, %c0_i32 : i32, i32
  }
  func.func @transform_1(%arg0: i32) -> (i32, i32) {
    %c0_i32 = arith.constant 0 : i32
    %c0_i32_0 = arith.constant 0 : i32
    %c0_i32_1 = arith.constant 0 : i32
    return %c0_i32, %c0_i32_0 : i32, i32
  }
  func.func @transform_2(%arg0: i32) -> (i32, i32) {
    %c0_i32 = arith.constant 0 : i32
    %c0_i32_0 = arith.constant 0 : i32
    %c0_i32_1 = arith.constant 0 : i32
    return %c0_i32, %c0_i32_0 : i32, i32
  }
  func.func @transform_3(%arg0: i32) -> (i32, i32) {
    %c0_i32 = arith.constant 0 : i32
    %c0_i32_0 = arith.constant 0 : i32
    return %arg0, %c0_i32 : i32, i32
  }
  func.func @transform_4(%arg0: i32) -> (i32, i32) {
    %c0_i32 = arith.constant 0 : i32
    %c0_i32_0 = arith.constant 0 : i32
    return %arg0, %c0_i32 : i32, i32
  }
}

</mosaic_0001>

<bundles_post_ra>
// kernel: tpu_custom_call.1
= control target key start
LH: loop header
LB: loop body
LE: loop exit
PB: predicated region body
PF: predicated region fallthrough
CT: control target
= control target key end

     0   :  { %10 = vsyncpa [#allocation3], 0  ;;  %s1649_s0 = inlined_call_operand.hbm [shape: f32[16,32], index: 0, kind: input, shape index: {}]   ;;  %s1650_s1 = inlined_call_operand.hbm [shape: f32[32,384], index: 1, kind: input, shape index: {}]   ;;  %s1651_s2 = inlined_call_operand.hbm [shape: f32[384,768], index: 2, kind: input, shape index: {}]   ;;  %s1652_s3 = inlined_call_operand.hbm [shape: f32[16,384], index: 3, kind: output, shape index: {0}]   ;;  %s1653_s4 = inlined_call_operand.hbm [shape: f32[16,384], index: 4, kind: output, shape index: {1}]  }
   0x1   :  { %11 = vsyncpa [#allocation6], 0 }
   0x2   :  { %12 = vsyncpa [#allocation4], 0 }
   0x3   :  { %13 = vsyncpa [#allocation10], 0  ;;  %s1501_s15 = smov [#allocation5]   ;;  %s1383_s19 = scalar_lea.hbm %s1650_s1, 1536 }
   0x4   :  { %s31_s16 = sshll.u32 %s1501_s15, 4  ;;  %p1384_p0 = scmp.ne.s32.totalorder %s1650_s1, %s1383_s19  ;;  %s32_s16 = int_to_ptr.vmem [resolvable:$true] %s31_s16 }
   0x5   :  { %p1387_p1 = scmp.lt.u32.totalorder %s1383_s19, %s1650_s1 }
   0x7   :  { %p1389_p2 = pnand %p1387_p1, %p1384_p0 }
   0x9   :  { %1392 = shalt.err (!%p1389_p2)
}
   0xa   :  { %s1393_s24 = scalar_lea.vmem %s32_s16, 1536  ;;  %p1398_p4 = scmp.lt.s32.totalorder %s32_s16, %s32_s16 }
   0xb   :  { %p1394_p3 = scmp.ne.s32.totalorder %s32_s16, %s1393_s24  ;;  %p1399_p5 = scmp.lt.s32.totalorder %s1393_s24, %s1393_s24 }
   0xd   :  { %p1400_p6 = por %p1399_p5, %p1398_p4 }
   0xf   :  { %p1401_p7 = pnand %p1400_p6, %p1394_p3 }
  0x11   :  { %1404 = shalt.err (!%p1401_p7)
}
  0x12   :  { %s1502_s25 = smov 384   ;;  %s1503_s26 = smov 24  }
  0x13   :  { %37 = dma.hbm_to_vmem [thread:$0]  %s1650_s1, 1536, %s32_s16, [#allocation6], %s1502_s25, %s1502_s25, %s1503_s26  }
  0x14   :  { %s1504_s29 = smov [#allocation2]   ;;  %s1405_s7 = scalar_lea.hbm %s1649_s0, 256 }
  0x15   :  { %s19_s30 = sshll.u32 %s1504_s29, 4  ;;  %p1406_p8 = scmp.ne.s32.totalorder %s1649_s0, %s1405_s7  ;;  %s20_s30 = int_to_ptr.vmem [resolvable:$true] %s19_s30 }
  0x16   :  { %p1409_p9 = scmp.lt.u32.totalorder %s1405_s7, %s1649_s0 }
  0x18   :  { %p1411_p10 = pnand %p1409_p9, %p1406_p8 }
  0x1a   :  { %1414 = shalt.err (!%p1411_p10)
}
  0x1b   :  { %s1415_s12 = scalar_lea.vmem %s20_s30, 256  ;;  %p1420_p12 = scmp.lt.s32.totalorder %s20_s30, %s20_s30 }
  0x1c   :  { %p1416_p11 = scmp.ne.s32.totalorder %s20_s30, %s1415_s12  ;;  %p1421_p13 = scmp.lt.s32.totalorder %s1415_s12, %s1415_s12 }
  0x1e   :  { %p1422_p0 = por %p1421_p13, %p1420_p12 }
  0x20   :  { %p1423_p1 = pnand %p1422_p0, %p1416_p11 }
  0x22   :  { %1426 = shalt.err (!%p1423_p1)
}
  0x23   :  { %s1505_s1 = smov 128   ;;  %s1506_s13 = smov 8  }
  0x24   :  { %25 = dma.hbm_to_vmem [thread:$0]  %s1649_s0, 256, %s20_s30, [#allocation3], %s1505_s1, %s1505_s1, %s1506_s13  }
  0x25   :  { %s1507_s16 = smov [#allocation7]   ;;  %s1427_s20 = scalar_lea.hbm %s1651_s2, 36864 }
  0x26   :  { %s43_s17 = sshll.u32 %s1507_s16, 4  ;;  %p1428_p2 = scmp.ne.s32.totalorder %s1651_s2, %s1427_s20  ;;  %s44_s17 = int_to_ptr.vmem [resolvable:$true] %s43_s17 }
  0x27   :  { %p1431_p3 = scmp.lt.u32.totalorder %s1427_s20, %s1651_s2 }
  0x29   :  { %p1433_p4 = pnand %p1431_p3, %p1428_p2 }
  0x2b   :  { %1436 = shalt.err (!%p1433_p4)
}
  0x2c   :  { %s1437_s27 = scalar_lea.vmem %s44_s17, 36864  ;;  %p1442_p6 = scmp.lt.s32.totalorder %s44_s17, %s44_s17 }
  0x2d   :  { %p1438_p5 = scmp.ne.s32.totalorder %s44_s17, %s1437_s27  ;;  %p1443_p7 = scmp.lt.s32.totalorder %s1437_s27, %s1437_s27 }
  0x2f   :  { %p1444_p8 = por %p1443_p7, %p1442_p6 }
  0x31   :  { %p1445_p9 = pnand %p1444_p8, %p1438_p5 }
  0x33   :  { %1448 = shalt.err (!%p1445_p9)
}
  0x34   :  { %s1508_s0 = smov 768   ;;  %s1509_s28 = smov 48  }
  0x35   :  { %49 = dma.hbm_to_vmem [thread:$0]  %s1651_s2, 36864, %s44_s17, [#allocation6], %s1508_s0, %s1508_s0, %s1509_s28  }
  0x36   :  { %1493 = dma.done.wait [#allocation3], 256  }
  0x37   :  { %1494 = vsyncadd [#allocation3], 4294967040 }
  0x38   :  { %1495 = dma.done.wait [#allocation6], 38400  }
  0x39   :  { %1496 = vsyncadd [#allocation6], 4294928896  ;;  %v1510_v0 = vmov 0.0   ;;  %v62_v1 = vld [vmem:[#allocation5 + $0x8] sm:$0xff]  ;;  %v65_v2 = vld [vmem:[#allocation5 + $0x20] sm:$0xff]  ;;  %vm73_vm0 = vcmask 261120  }
  0x3a   :  { %144 = vmatprep.mubr.f32.mxu0 %v1510_v0  ;;  %v61_v3 = vld [vmem:[#allocation5] sm:$0xff]  ;;  %v1055_v4 = vpack.c.bf16 %v65_v2, %v62_v1  ;;  %v64_v5 = vld [vmem:[#allocation5 + $0x18] sm:$0xff]  ;;  %v71_v7 = vld [vmem:[#allocation5 + $0x50] sm:$0xff]  ;;  %s1511_s2 = smov [#allocation8]  }
  0x3b   :  { %v68_v6 = vld [vmem:[#allocation5 + $0x38] sm:$0xff]  ;;  %v1057_v8 = vpack.c.bf16 %v64_v5, %v61_v3  ;;  %v67_v10 = vld [vmem:[#allocation5 + $0x30] sm:$0xff]  ;;  %v70_v11 = vld [vmem:[#allocation5 + $0x48] sm:$0xff]  ;;  %s1005_s5 = sshll.u32 %s1511_s2, 4  ;;  %s1006_s5 = int_to_ptr.vmem [resolvable:$true] %s1005_s5 }
  0x3c   :  { %v1059_v9 = vpack.c.bf16 %v71_v7, %v68_v6  ;;  %1056 = vmatprep.subr.bf16.mxu0 %v1055_v4  ;;  %v63_v12 = vld [vmem:[#allocation5 + $0x10] sm:$0xff]  ;;  %v66_v13 = vld [vmem:[#allocation5 + $0x28] sm:$0xff]  ;;  %v1061_v14 = vpack.c.bf16 %v70_v11, %v67_v10  ;;  %v69_v15 = vld [vmem:[#allocation5 + $0x40] sm:$0xff]  ;;  %s1449_s6 = scalar_lea.vmem %s1006_s5, 768  ;;  %p1454_p11 = scmp.lt.s32.totalorder %s1006_s5, %s1006_s5 }
  0x3d   :  { %1058 = vmatpush1.bf16.msra.mxu0 %v1057_v8  ;;  %v72_v16 = vld [vmem:[#allocation5 + $0x58] sm:$0xff]  ;;  %v239_v17 = vld [vmem:[#allocation7 + $0x8] sm:$0xff]  ;;  %v1063_v18 = vpack.c.bf16 %v66_v13, %v63_v12  ;;  %v238_v20 = vld [vmem:[#allocation7] sm:$0xff]  ;;  %p1450_p10 = scmp.ne.s32.totalorder %s1006_s5, %s1449_s6  ;;  %p1455_p12 = scmp.lt.s32.totalorder %s1449_s6, %s1449_s6 }
  0x3e   :  { %1060 = vmatprep.subr.bf16.mxu0 %v1059_v9  ;;  %v245_v19 = vld [vmem:[#allocation7 + $0x38] sm:$0xff]  ;;  %v244_v21 = vld [vmem:[#allocation7 + $0x30] sm:$0xff]  ;;  %v251_v24 = vld [vmem:[#allocation7 + $0x68] sm:$0xff]  ;;  %v1067_v32 = vpack.c.bf16 %v72_v16, %v69_v15 }
  0x3f   :  { %v1071_v22 = vpack.c.bf16 %v245_v19, %v239_v17  ;;  %v1073_v23 = vpack.c.bf16 %v244_v21, %v238_v20  ;;  %v257_v25 = vld [vmem:[#allocation7 + $0x98] sm:$0xff]  ;;  %v250_v26 = vld [vmem:[#allocation7 + $0x60] sm:$0xff]  ;;  %v256_v28 = vld [vmem:[#allocation7 + $0x90] sm:$0xff]  ;;  %p1456_p13 = por %p1455_p12, %p1454_p11 }
  0x40   :  { %v1075_v27 = vpack.c.bf16 %v257_v25, %v251_v24  ;;  %v263_v29 = vld [vmem:[#allocation7 + $0xc8] sm:$0xff]  ;;  %v269_v30 = vld [vmem:[#allocation7 + $0xf8] sm:$0xff]  ;;  %v59_v31 = vld [vmem:[#allocation2] sm:$0xff]  ;;  %v1077_v33 = vpack.c.bf16 %v256_v28, %v250_v26 }
  0x41   :  { %1062 = vmatpush1.bf16.msra.mxu0 %v1061_v14  ;;  %1072 = vmatprep.subr.bf16.mxu1 %v1071_v22  ;;  %v1079_v34 = vpack.c.bf16 %v269_v30, %v263_v29  ;;  %v262_v35 = vld [vmem:[#allocation7 + $0xc0] sm:$0xff]  ;;  %v268_v36 = vld [vmem:[#allocation7 + $0xf0] sm:$0xff]  ;;  %v275_v37 = vld [vmem:[#allocation7 + $0x128] sm:$0xff]  ;;  %p1457_p0 = pnand %p1456_p13, %p1450_p10 }
  0x42   :  { %1064 = vmatprep.subr.bf16.mxu0 %v1063_v18  ;;  %1074 = vmatpush1.bf16.msra.mxu1 %v1073_v23  ;;  %v281_v38 = vld [vmem:[#allocation7 + $0x158] sm:$0xff]  ;;  %v1081_v40 = vpack.c.bf16 %v268_v36, %v262_v35  ;;  %v274_v42 = vld [vmem:[#allocation7 + $0x120] sm:$0xff]  ;;  %v280_v43 = vld [vmem:[#allocation7 + $0x150] sm:$0xff] }
  0x43   :  { %1076 = vmatprep.subr.bf16.mxu1 %v1075_v27  ;;  %v60_v39 = vld [vmem:[#allocation2 + $0x8] sm:$0xff]  ;;  %v1083_v41 = vpack.c.bf16 %v281_v38, %v275_v37  ;;  %v287_v44 = vld [vmem:[#allocation7 + $0x188] sm:$0xff]  ;;  %v1085_v46 = vpack.c.bf16 %v280_v43, %v274_v42  ;;  %v286_v47 = vld [vmem:[#allocation7 + $0x180] sm:$0xff] }
  0x44   :  { %1034 = vmatmul.mubr.msk.f32.vlgmr.msra.gmra.mrb[0].mxu0 %vm73_vm0, %v59_v31  ;;  %v293_v45 = vld [vmem:[#allocation7 + $0x1b8] sm:$0xff]  ;;  %v292_v48 = vld [vmem:[#allocation7 + $0x1b0] sm:$0xff]  ;;  %v299_v50 = vld [vmem:[#allocation7 + $0x1e8] sm:$0xff] }
  0x45   :  { %1066 = vmatpush3.bf16.msra.mxu0 %v1063_v18  ;;  %150 = vmatprep.mubr.f32.mxu0 %v1510_v0  ;;  %v1087_v49 = vpack.c.bf16 %v293_v45, %v287_v44  ;;  %v431_v51 = vld [vmem:[#allocation7 + $0x608] sm:$0xff]  ;;  %v437_v52 = vld [vmem:[#allocation7 + $0x638] sm:$0xff]  ;;  %v430_v55 = vld [vmem:[#allocation7 + $0x600] sm:$0xff]  ;;  %v1089_v59 = vpack.c.bf16 %v292_v48, %v286_v47 }
  0x46   :  { %1068 = vmatprep.subr.bf16.mxu0 %v1067_v32  ;;  %1078 = vmatpush1.bf16.msra.mxu1 %v1077_v33  ;;  %v305_v53 = vld [vmem:[#allocation7 + $0x218] sm:$0xff]  ;;  %v1135_v54 = vpack.c.bf16 %v437_v52, %v431_v51  ;;  %v436_v56 = vld [vmem:[#allocation7 + $0x630] sm:$0xff]  ;;  %v443_v58 = vld [vmem:[#allocation7 + $0x668] sm:$0xff] }
  0x47   :  { %1080 = vmatprep.subr.bf16.mxu1 %v1079_v34  ;;  %v1137_v57 = vpack.c.bf16 %v436_v56, %v430_v55  ;;  %v298_v60 = vld [vmem:[#allocation7 + $0x1e0] sm:$0xff]  ;;  %v304_v61 = vld [vmem:[#allocation7 + $0x210] sm:$0xff]  ;;  %v449_v62 = vld [vmem:[#allocation7 + $0x698] sm:$0xff]  ;;  %v1091_v63 = vpack.c.bf16 %v305_v53, %v299_v50 }
  0x48   :  { %1035 = vmatmul.mubr.msk.f32.gmra.mrb[2].mxu0 %vm73_vm0, %v60_v39  ;;  %v311_v1 = vld [vmem:[#allocation7 + $0x248] sm:$0xff]  ;;  %v1139_v2 = vpack.c.bf16 %v449_v62, %v443_v58  ;;  %v442_v3 = vld [vmem:[#allocation7 + $0x660] sm:$0xff]  ;;  %v448_v4 = vld [vmem:[#allocation7 + $0x690] sm:$0xff]  ;;  %v1093_v11 = vpack.c.bf16 %v304_v61, %v298_v60 }
  0x49   :  { %1070 = vmatpush3.bf16.msra.mxu0 %v1067_v32  ;;  %1052 = vmatprep.mubr.msk.f32.mxu0 %vm73_vm0, %v59_v31  ;;  %v317_v5 = vld [vmem:[#allocation7 + $0x278] sm:$0xff]  ;;  %v1141_v6 = vpack.c.bf16 %v448_v4, %v442_v3  ;;  %v455_v7 = vld [vmem:[#allocation7 + $0x6c8] sm:$0xff]  ;;  %v454_v10 = vld [vmem:[#allocation7 + $0x6c0] sm:$0xff] }
  0x4a   :  { %1082 = vmatpush1.bf16.msra.mxu1 %v1081_v40  ;;  %1136 = vmatprep.subr.bf16.mxu0 %v1135_v54  ;;  %v461_v8 = vld [vmem:[#allocation7 + $0x6f8] sm:$0xff]  ;;  %v310_v12 = vld [vmem:[#allocation7 + $0x240] sm:$0xff]  ;;  %v316_v13 = vld [vmem:[#allocation7 + $0x270] sm:$0xff]  ;;  %v1095_v15 = vpack.c.bf16 %v317_v5, %v311_v1 }
  0x4b   :  { %1084 = vmatprep.subr.bf16.mxu1 %v1083_v41  ;;  %v1143_v9 = vpack.c.bf16 %v461_v8, %v455_v7  ;;  %v460_v14 = vld [vmem:[#allocation7 + $0x6f0] sm:$0xff]  ;;  %v323_v16 = vld [vmem:[#allocation7 + $0x2a8] sm:$0xff]  ;;  %v473_v19 = vld [vmem:[#allocation7 + $0x758] sm:$0xff]  ;;  %v1097_v25 = vpack.c.bf16 %v316_v13, %v310_v12 }
  0x4c   :  { %1053 = vmatmul.mubr.msk.f32.vlgmr.msra.gmra.mrb[4].mxu0 %vm73_vm0, %v60_v39  ;;  %v1145_v17 = vpack.c.bf16 %v460_v14, %v454_v10  ;;  %v467_v18 = vld [vmem:[#allocation7 + $0x728] sm:$0xff]  ;;  %v329_v20 = vld [vmem:[#allocation7 + $0x2d8] sm:$0xff]  ;;  %v466_v22 = vld [vmem:[#allocation7 + $0x720] sm:$0xff] }
  0x4d   :  { %667 = vmatprep.mubr.f32.mxu0 %v1510_v0  ;;  %1138 = vmatpush1.bf16.msra.mxu0 %v1137_v57  ;;  %v1147_v21 = vpack.c.bf16 %v473_v19, %v467_v18  ;;  %v472_v23 = vld [vmem:[#allocation7 + $0x750] sm:$0xff]  ;;  %v479_v24 = vld [vmem:[#allocation7 + $0x788] sm:$0xff]  ;;  %v485_v26 = vld [vmem:[#allocation7 + $0x7b8] sm:$0xff]  ;;  %v1099_v27 = vpack.c.bf16 %v329_v20, %v323_v16 }
  0x4e   :  { %1086 = vmatpush1.bf16.msra.mxu1 %v1085_v46  ;;  %1140 = vmatprep.subr.bf16.mxu0 %v1139_v2  ;;  %v322_v28 = vld [vmem:[#allocation7 + $0x2a0] sm:$0xff]  ;;  %v328_v29 = vld [vmem:[#allocation7 + $0x2d0] sm:$0xff]  ;;  %v335_v30 = vld [vmem:[#allocation7 + $0x308] sm:$0xff]  ;;  %v1149_v31 = vpack.c.bf16 %v472_v23, %v466_v22  ;;  %v1151_v33 = vpack.c.bf16 %v485_v26, %v479_v24 }
  0x4f   :  { %1088 = vmatprep.subr.bf16.mxu1 %v1087_v49  ;;  %v341_v32 = vld [vmem:[#allocation7 + $0x338] sm:$0xff]  ;;  %v478_v34 = vld [vmem:[#allocation7 + $0x780] sm:$0xff]  ;;  %v484_v35 = vld [vmem:[#allocation7 + $0x7b0] sm:$0xff]  ;;  %v1101_v38 = vpack.c.bf16 %v328_v29, %v322_v28 }
  0x50   :  { %v491_v36 = vld [vmem:[#allocation7 + $0x7e8] sm:$0xff]  ;;  %v497_v37 = vld [vmem:[#allocation7 + $0x818] sm:$0xff]  ;;  %v1103_v39 = vpack.c.bf16 %v341_v32, %v335_v30  ;;  %v334_v40 = vld [vmem:[#allocation7 + $0x300] sm:$0xff]  ;;  %v1153_v42 = vpack.c.bf16 %v484_v35, %v478_v34 }
  0x51   :  { %1142 = vmatpush1.bf16.msra.mxu0 %v1141_v6  ;;  %v340_v41 = vld [vmem:[#allocation7 + $0x330] sm:$0xff]  ;;  %v347_v43 = vld [vmem:[#allocation7 + $0x368] sm:$0xff]  ;;  %v353_v44 = vld [vmem:[#allocation7 + $0x398] sm:$0xff]  ;;  %v1155_v45 = vpack.c.bf16 %v497_v37, %v491_v36 }
  0x52   :  { %1090 = vmatpush1.bf16.msra.mxu1 %v1089_v59  ;;  %1144 = vmatprep.subr.bf16.mxu0 %v1143_v9  ;;  %v1105_v46 = vpack.c.bf16 %v340_v41, %v334_v40  ;;  %v1107_v47 = vpack.c.bf16 %v353_v44, %v347_v43  ;;  %v346_v48 = vld [vmem:[#allocation7 + $0x360] sm:$0xff]  ;;  %v352_v49 = vld [vmem:[#allocation7 + $0x390] sm:$0xff]  ;;  %v359_v50 = vld [vmem:[#allocation7 + $0x3c8] sm:$0xff] }
  0x53   :  { %1092 = vmatprep.subr.bf16.mxu1 %v1091_v63  ;;  %v365_v51 = vld [vmem:[#allocation7 + $0x3f8] sm:$0xff]  ;;  %v1109_v52 = vpack.c.bf16 %v352_v49, %v346_v48  ;;  %v358_v54 = vld [vmem:[#allocation7 + $0x3c0] sm:$0xff]  ;;  %v364_v55 = vld [vmem:[#allocation7 + $0x3f0] sm:$0xff] }
  0x54   :  { %v1111_v53 = vpack.c.bf16 %v365_v51, %v359_v50  ;;  %v371_v56 = vld [vmem:[#allocation7 + $0x428] sm:$0xff]  ;;  %v377_v57 = vld [vmem:[#allocation7 + $0x458] sm:$0xff]  ;;  %v1113_v58 = vpack.c.bf16 %v364_v55, %v358_v54  ;;  %v370_v60 = vld [vmem:[#allocation7 + $0x420] sm:$0xff] }
  0x55   :  { %1146 = vmatpush1.bf16.msra.mxu0 %v1145_v17  ;;  %v1115_v59 = vpack.c.bf16 %v377_v57, %v371_v56  ;;  %v376_v61 = vld [vmem:[#allocation7 + $0x450] sm:$0xff]  ;;  %v383_v62 = vld [vmem:[#allocation7 + $0x488] sm:$0xff]  ;;  %v389_v63 = vld [vmem:[#allocation7 + $0x4b8] sm:$0xff] }
  0x56   :  { %1094 = vmatpush1.bf16.msra.mxu1 %v1093_v11  ;;  %1148 = vmatprep.subr.bf16.mxu0 %v1147_v21  ;;  %v1117_v1 = vpack.c.bf16 %v376_v61, %v370_v60  ;;  %v1119_v2 = vpack.c.bf16 %v389_v63, %v383_v62  ;;  %v382_v3 = vld [vmem:[#allocation7 + $0x480] sm:$0xff]  ;;  %v388_v4 = vld [vmem:[#allocation7 + $0x4b0] sm:$0xff]  ;;  %v395_v5 = vld [vmem:[#allocation7 + $0x4e8] sm:$0xff] }
  0x57   :  { %1096 = vmatprep.subr.bf16.mxu1 %v1095_v15  ;;  %v401_v6 = vld [vmem:[#allocation7 + $0x518] sm:$0xff]  ;;  %v1121_v7 = vpack.c.bf16 %v388_v4, %v382_v3  ;;  %v394_v9 = vld [vmem:[#allocation7 + $0x4e0] sm:$0xff]  ;;  %v400_v10 = vld [vmem:[#allocation7 + $0x510] sm:$0xff] }
  0x58   :  { %v1123_v8 = vpack.c.bf16 %v401_v6, %v395_v5  ;;  %v407_v11 = vld [vmem:[#allocation7 + $0x548] sm:$0xff]  ;;  %v413_v12 = vld [vmem:[#allocation7 + $0x578] sm:$0xff]  ;;  %v1125_v13 = vpack.c.bf16 %v400_v10, %v394_v9  ;;  %v406_v15 = vld [vmem:[#allocation7 + $0x540] sm:$0xff] }
  0x59   :  { %1150 = vmatpush1.bf16.msra.mxu0 %v1149_v31  ;;  %v1127_v14 = vpack.c.bf16 %v413_v12, %v407_v11  ;;  %v412_v16 = vld [vmem:[#allocation7 + $0x570] sm:$0xff]  ;;  %v419_v18 = vld [vmem:[#allocation7 + $0x5a8] sm:$0xff]  ;;  %v425_v19 = vld [vmem:[#allocation7 + $0x5d8] sm:$0xff] }
  0x5a   :  { %1098 = vmatpush1.bf16.msra.mxu1 %v1097_v25  ;;  %1152 = vmatprep.subr.bf16.mxu0 %v1151_v33  ;;  %v1129_v17 = vpack.c.bf16 %v412_v16, %v406_v15  ;;  %v490_v20 = vld [vmem:[#allocation7 + $0x7e0] sm:$0xff]  ;;  %v1131_v21 = vpack.c.bf16 %v425_v19, %v419_v18  ;;  %v496_v22 = vld [vmem:[#allocation7 + $0x810] sm:$0xff]  ;;  %v509_v28 = vld [vmem:[#allocation7 + $0x878] sm:$0xff] }
  0x5b   :  { %1100 = vmatprep.subr.bf16.mxu1 %v1099_v27  ;;  %v418_v23 = vld [vmem:[#allocation7 + $0x5a0] sm:$0xff]  ;;  %v424_v24 = vld [vmem:[#allocation7 + $0x5d0] sm:$0xff]  ;;  %v1157_v25 = vpack.c.bf16 %v496_v22, %v490_v20  ;;  %v503_v27 = vld [vmem:[#allocation7 + $0x848] sm:$0xff] }
  0x5c   :  { %v1133_v26 = vpack.c.bf16 %v424_v24, %v418_v23  ;;  %v1159_v29 = vpack.c.bf16 %v509_v28, %v503_v27  ;;  %v502_v30 = vld [vmem:[#allocation7 + $0x840] sm:$0xff]  ;;  %v508_v31 = vld [vmem:[#allocation7 + $0x870] sm:$0xff]  ;;  %v241_v32 = vld [vmem:[#allocation7 + $0x18] sm:$0xff] }
  0x5d   :  { %1154 = vmatpush1.bf16.msra.mxu0 %v1153_v42  ;;  %v1161_v33 = vpack.c.bf16 %v508_v31, %v502_v30  ;;  %v247_v34 = vld [vmem:[#allocation7 + $0x48] sm:$0xff]  ;;  %v521_v37 = vld [vmem:[#allocation7 + $0x8d8] sm:$0xff]  ;;  %v520_v40 = vld [vmem:[#allocation7 + $0x8d0] sm:$0xff] }
  0x5e   :  { %1102 = vmatpush1.bf16.msra.mxu1 %v1101_v38  ;;  %1156 = vmatprep.subr.bf16.mxu0 %v1155_v45  ;;  %v1167_v35 = vpack.c.bf16 %v247_v34, %v241_v32  ;;  %v515_v36 = vld [vmem:[#allocation7 + $0x8a8] sm:$0xff]  ;;  %v249_v43 = vld [vmem:[#allocation7 + $0x58] sm:$0xff]  ;;  %v240_v45 = vld [vmem:[#allocation7 + $0x10] sm:$0xff] }
  0x5f   :  { %1104 = vmatprep.subr.bf16.mxu1 %v1103_v39  ;;  %v1163_v38 = vpack.c.bf16 %v521_v37, %v515_v36  ;;  %v514_v39 = vld [vmem:[#allocation7 + $0x8a0] sm:$0xff]  ;;  %v243_v42 = vld [vmem:[#allocation7 + $0x28] sm:$0xff]  ;;  %v253_v48 = vld [vmem:[#allocation7 + $0x78] sm:$0xff] }
  0x60   :  { %v1165_v41 = vpack.c.bf16 %v520_v40, %v514_v39  ;;  %v1263_v44 = vpack.c.bf16 %v249_v43, %v243_v42  ;;  %v259_v49 = vld [vmem:[#allocation7 + $0xa8] sm:$0xff]  ;;  %v252_v55 = vld [vmem:[#allocation7 + $0x70] sm:$0xff]  ;;  %v258_v56 = vld [vmem:[#allocation7 + $0xa0] sm:$0xff] }
  0x61   :  { %1158 = vmatpush1.bf16.msra.mxu0 %v1157_v25  ;;  %v1171_v54 = vpack.c.bf16 %v259_v49, %v253_v48  ;;  %v1173_v62 = vpack.c.bf16 %v258_v56, %v252_v55  ;;  %v242_v63 = vld [vmem:[#allocation7 + $0x20] sm:$0xff]  ;;  %v255_v6 = vld [vmem:[#allocation7 + $0x88] sm:$0xff]  ;;  %v277_v9 = vld [vmem:[#allocation7 + $0x138] sm:$0xff] }
  0x62   :  { %1106 = vmatpush1.bf16.msra.mxu1 %v1105_v46  ;;  %1160 = vmatprep.subr.bf16.mxu0 %v1159_v29  ;;  %v246_v46 = vld [vmem:[#allocation7 + $0x40] sm:$0xff]  ;;  %v283_v10 = vld [vmem:[#allocation7 + $0x168] sm:$0xff]  ;;  %v276_v18 = vld [vmem:[#allocation7 + $0x130] sm:$0xff] }
  0x63   :  { %1108 = vmatprep.subr.bf16.mxu1 %v1107_v47  ;;  %v270_v5 = vld [vmem:[#allocation7 + $0x100] sm:$0xff]  ;;  %v1179_v19 = vpack.c.bf16 %v283_v10, %v277_v9  ;;  %v273_v22 = vld [vmem:[#allocation7 + $0x118] sm:$0xff]  ;;  %v295_v24 = vld [vmem:[#allocation7 + $0x1c8] sm:$0xff] }
  0x64   :  { %v254_v16 = vld [vmem:[#allocation7 + $0x80] sm:$0xff]  ;;  %v289_v23 = vld [vmem:[#allocation7 + $0x198] sm:$0xff]  ;;  %v272_v30 = vld [vmem:[#allocation7 + $0x110] sm:$0xff] }
  0x65   :  { %1162 = vmatpush1.bf16.msra.mxu0 %v1161_v33  ;;  %v282_v20 = vld [vmem:[#allocation7 + $0x160] sm:$0xff]  ;;  %v288_v31 = vld [vmem:[#allocation7 + $0x190] sm:$0xff]  ;;  %v1183_v32 = vpack.c.bf16 %v295_v24, %v289_v23  ;;  %v279_v34 = vld [vmem:[#allocation7 + $0x148] sm:$0xff] }
  0x66   :  { %1110 = vmatpush1.bf16.msra.mxu1 %v1109_v52  ;;  %1164 = vmatprep.subr.bf16.mxu0 %v1163_v38  ;;  %v1169_v52 = vpack.c.bf16 %v246_v46, %v240_v45  ;;  %v1181_v27 = vpack.c.bf16 %v282_v20, %v276_v18  ;;  %v266_v29 = vld [vmem:[#allocation7 + $0xe0] sm:$0xff]  ;;  %v301_v36 = vld [vmem:[#allocation7 + $0x1f8] sm:$0xff]  ;;  %v307_v37 = vld [vmem:[#allocation7 + $0x228] sm:$0xff] }
  0x67   :  { %1112 = vmatprep.subr.bf16.mxu1 %v1111_v53  ;;  %v294_v33 = vld [vmem:[#allocation7 + $0x1c0] sm:$0xff]  ;;  %v1273_v38 = vpack.c.bf16 %v272_v30, %v266_v29  ;;  %v284_v42 = vld [vmem:[#allocation7 + $0x170] sm:$0xff]  ;;  %v291_v46 = vld [vmem:[#allocation7 + $0x1a8] sm:$0xff] }
  0x68   :  { %v1185_v39 = vpack.c.bf16 %v294_v33, %v288_v31  ;;  %v300_v43 = vld [vmem:[#allocation7 + $0x1f0] sm:$0xff]  ;;  %v306_v45 = vld [vmem:[#allocation7 + $0x220] sm:$0xff]  ;;  %v313_v48 = vld [vmem:[#allocation7 + $0x258] sm:$0xff] }
  0x69   :  { %1166 = vmatpush1.bf16.msra.mxu0 %v1165_v41  ;;  %v278_v41 = vld [vmem:[#allocation7 + $0x140] sm:$0xff]  ;;  %v319_v49 = vld [vmem:[#allocation7 + $0x288] sm:$0xff]  ;;  %v296_v55 = vld [vmem:[#allocation7 + $0x1d0] sm:$0xff] }
  0x6a   :  { %1114 = vmatpush1.bf16.msra.mxu1 %v1113_v58  ;;  %1264 = vmatprep.subr.bf16.mxu0 %v1263_v44  ;;  %v265_v58 = vld [vmem:[#allocation7 + $0xd8] sm:$0xff]  ;;  %v1187_v44 = vpack.c.bf16 %v307_v37, %v301_v36  ;;  %v312_v56 = vld [vmem:[#allocation7 + $0x250] sm:$0xff]  ;;  %v330_v9 = vld [vmem:[#allocation7 + $0x2e0] sm:$0xff] }
  0x6b   :  { %1116 = vmatprep.subr.bf16.mxu1 %v1115_v59  ;;  %v271_v59 = vld [vmem:[#allocation7 + $0x108] sm:$0xff]  ;;  %v314_v18 = vld [vmem:[#allocation7 + $0x260] sm:$0xff]  ;;  %v336_v20 = vld [vmem:[#allocation7 + $0x310] sm:$0xff] }
  0x6c   :  { %v1175_v4 = vpack.c.bf16 %v271_v59, %v265_v58  ;;  %v318_v58 = vld [vmem:[#allocation7 + $0x280] sm:$0xff]  ;;  %v303_v59 = vld [vmem:[#allocation7 + $0x208] sm:$0xff]  ;;  %v333_v24 = vld [vmem:[#allocation7 + $0x2f8] sm:$0xff] }
  0x6d   :  { %v315_v10 = vld [vmem:[#allocation7 + $0x268] sm:$0xff]  ;;  %v326_v31 = vld [vmem:[#allocation7 + $0x2c0] sm:$0xff]  ;;  %v348_v33 = vld [vmem:[#allocation7 + $0x370] sm:$0xff] }
  0x6e   :  { %1118 = vmatpush1.bf16.msra.mxu1 %v1117_v1  ;;  %v248_v1 = vld [vmem:[#allocation7 + $0x50] sm:$0xff]  ;;  %v327_v23 = vld [vmem:[#allocation7 + $0x2c8] sm:$0xff]  ;;  %v345_v37 = vld [vmem:[#allocation7 + $0x358] sm:$0xff] }
  0x6f   :  { %1120 = vmatprep.subr.bf16.mxu1 %v1119_v2  ;;  %v264_v2 = vld [vmem:[#allocation7 + $0xd0] sm:$0xff]  ;;  %v1265_v12 = vpack.c.bf16 %v248_v1, %v242_v63  ;;  %v331_v63 = vld [vmem:[#allocation7 + $0x2e8] sm:$0xff]  ;;  %v1291_v30 = vpack.c.bf16 %v333_v24, %v327_v23  ;;  %v402_v24 = vld [vmem:[#allocation7 + $0x520] sm:$0xff] }
  0x70   :  { %v339_v36 = vld [vmem:[#allocation7 + $0x328] sm:$0xff] }
  0x72   :  { %1122 = vmatpush1.bf16.msra.mxu1 %v1121_v7  ;;  %v261_v7 = vld [vmem:[#allocation7 + $0xb8] sm:$0xff] }
  0x73   :  { %1124 = vmatprep.subr.bf16.mxu1 %v1123_v8  ;;  %v1267_v15 = vpack.c.bf16 %v261_v7, %v255_v6  ;;  %v308_v6 = vld [vmem:[#allocation7 + $0x230] sm:$0xff] }
  0x74   :  { %v324_v7 = vld [vmem:[#allocation7 + $0x2b0] sm:$0xff] }
  0x76   :  { %1126 = vmatpush1.bf16.msra.mxu1 %v1125_v13 }
  0x77   :  { %1128 = vmatprep.subr.bf16.mxu1 %v1127_v14  ;;  %v1177_v14 = vpack.c.bf16 %v270_v5, %v264_v2  ;;  %v1193_v2 = vpack.c.bf16 %v318_v58, %v312_v56  ;;  %v302_v5 = vld [vmem:[#allocation7 + $0x200] sm:$0xff]  ;;  %v372_v58 = vld [vmem:[#allocation7 + $0x430] sm:$0xff] }
  0x78   :  { %v350_v56 = vld [vmem:[#allocation7 + $0x380] sm:$0xff] }
  0x7a   :  { %1130 = vmatpush1.bf16.msra.mxu1 %v1129_v17  ;;  %v260_v17 = vld [vmem:[#allocation7 + $0xb0] sm:$0xff] }
  0x7b   :  { %1132 = vmatprep.subr.bf16.mxu1 %v1131_v21  ;;  %v267_v21 = vld [vmem:[#allocation7 + $0xe8] sm:$0xff]  ;;  %v1269_v25 = vpack.c.bf16 %v260_v17, %v254_v16  ;;  %v1197_v16 = vpack.c.bf16 %v330_v9, %v324_v7  ;;  %v362_v7 = vld [vmem:[#allocation7 + $0x3e0] sm:$0xff]  ;;  %v384_v9 = vld [vmem:[#allocation7 + $0x490] sm:$0xff] }
  0x7c   :  { %v1271_v28 = vpack.c.bf16 %v273_v22, %v267_v21  ;;  %v342_v22 = vld [vmem:[#allocation7 + $0x340] sm:$0xff] }
  0x7d   :  { %v1201_v29 = vpack.c.bf16 %v342_v22, %v336_v20  ;;  %v374_v20 = vld [vmem:[#allocation7 + $0x440] sm:$0xff]  ;;  %v396_v22 = vld [vmem:[#allocation7 + $0x4f0] sm:$0xff] }
  0x7e   :  { %1134 = vmatpush1.bf16.msra.mxu1 %v1133_v26 }
  0x7f   :  { %1168 = vmatprep.subr.bf16.mxu1 %v1167_v35  ;;  %v285_v35 = vld [vmem:[#allocation7 + $0x178] sm:$0xff] }
  0x80   :  { %v1275_v40 = vpack.c.bf16 %v285_v35, %v279_v34  ;;  %v354_v35 = vld [vmem:[#allocation7 + $0x3a0] sm:$0xff] }
 0x117   :  { %v146_v47 = vpop.f32.mrb[0].mxu0 }
 0x118   :  { %v148_v50 = vpop.f32.mrb[1].mxu0  ;;  %v1586_v53 = vmax.f32 %v146_v47, 0.0  ;;  %v297_v47 = vld [vmem:[#allocation7 + $0x1d8] sm:$0xff] }
 0x119   :  { %v1584_v51 = vmax.f32 %v148_v50, 0.0  ;;  %v1277_v50 = vpack.c.bf16 %v284_v42, %v278_v41  ;;  %v1205_v41 = vpack.c.bf16 %v354_v35, %v348_v33  ;;  %v1295_v42 = vpack.c.bf16 %v345_v37, %v339_v36  ;;  %v386_v33 = vld [vmem:[#allocation7 + $0x4a0] sm:$0xff]  ;;  %v408_v35 = vld [vmem:[#allocation7 + $0x550] sm:$0xff] }
 0x11a   :  { %v414_v37 = vld [vmem:[#allocation7 + $0x580] sm:$0xff] }
 0x11b   :  { %v152_v57 = vpop.f32.mrb[2].mxu0  ;;  %590 = vmatprep.mubr.f32.mxu1 %v1584_v51 }
 0x11c   :  { %v154_v60 = vpop.f32.mrb[3].mxu0  ;;  %591 = vmatmul.mubr.f32.vlgmr.msra.gmra.mrb[0].mxu1 %v1586_v53  ;;  %v1592_v3 = vmax.f32 %v152_v57, 0.0  ;;  %v1191_v57 = vpack.c.bf16 %v319_v49, %v313_v48  ;;  %v351_v48 = vld [vmem:[#allocation7 + $0x388] sm:$0xff]  ;;  %v357_v49 = vld [vmem:[#allocation7 + $0x3b8] sm:$0xff] }
 0x11d   :  { %v1590_v61 = vmax.f32 %v154_v60, 0.0  ;;  %1170 = vmatpush1.bf16.msra.mxu1 %v1169_v52  ;;  %v1279_v52 = vpack.c.bf16 %v297_v47, %v291_v46  ;;  %v309_v60 = vld [vmem:[#allocation7 + $0x238] sm:$0xff]  ;;  %v366_v47 = vld [vmem:[#allocation7 + $0x400] sm:$0xff] }
 0x11e   :  { %1172 = vmatprep.subr.bf16.mxu1 %v1171_v54  ;;  %v290_v54 = vld [vmem:[#allocation7 + $0x1a0] sm:$0xff] }
 0x11f   :  { %v1054_v8 = vpop.f32.mrb[4].mxu0  ;;  %596 = vmatprep.mubr.f32.mxu1 %v1590_v61  ;;  %v1281_v1 = vpack.c.bf16 %v296_v55, %v290_v54  ;;  %v1299_v55 = vpack.c.bf16 %v357_v49, %v351_v48  ;;  %v426_v49 = vld [vmem:[#allocation7 + $0x5e0] sm:$0xff] }
 0x120   :  { %v223_v11 = vpop.f32.mrb[5].mxu0  ;;  %597 = vmatmul.mubr.f32.gmra.mrb[2].mxu1 %v1592_v3  ;;  %v1601_v26 = vmax.f32 %v1054_v8, 0.0 }
 0x121   :  { %v1596_v13 = vmax.f32 %v223_v11, 0.0  ;;  %1174 = vmatpush1.bf16.msra.mxu1 %v1173_v62  ;;  %744 = vmatprep.mubr.f32.mxu1 %v1584_v51  ;;  %v325_v62 = vld [vmem:[#allocation7 + $0x2b8] sm:$0xff] }
 0x122   :  { %1176 = vmatprep.subr.bf16.mxu1 %v1175_v4  ;;  %v1283_v4 = vpack.c.bf16 %v309_v60, %v303_v59  ;;  %v1195_v8 = vpack.c.bf16 %v331_v63, %v325_v62  ;;  %v321_v11 = vld [vmem:[#allocation7 + $0x298] sm:$0xff]  ;;  %v378_v60 = vld [vmem:[#allocation7 + $0x460] sm:$0xff]  ;;  %v363_v62 = vld [vmem:[#allocation7 + $0x3e8] sm:$0xff] }
 0x123   :  { %668 = vmatmul.mubr.f32.vlgmr.msra.gmra.mrb[6].mxu0 %v1596_v13  ;;  %v1287_v17 = vpack.c.bf16 %v321_v11, %v315_v10  ;;  %v369_v63 = vld [vmem:[#allocation7 + $0x418] sm:$0xff]  ;;  %v390_v11 = vld [vmem:[#allocation7 + $0x4c0] sm:$0xff] }
 0x124   :  { %1266 = vmatpush1.bf16.msra.mxu0 %v1265_v12  ;;  %673 = vmatprep.mubr.f32.mxu0 %v1510_v0  ;;  %v337_v12 = vld [vmem:[#allocation7 + $0x318] sm:$0xff] }
 0x125   :  { %1178 = vmatpush1.bf16.msra.mxu1 %v1177_v14  ;;  %1268 = vmatprep.subr.bf16.mxu0 %v1267_v15  ;;  %v343_v14 = vld [vmem:[#allocation7 + $0x348] sm:$0xff]  ;;  %v1285_v15 = vpack.c.bf16 %v308_v6, %v302_v5  ;;  %v1213_v5 = vpack.c.bf16 %v378_v60, %v372_v58  ;;  %v1303_v6 = vpack.c.bf16 %v369_v63, %v363_v62  ;;  %v410_v58 = vld [vmem:[#allocation7 + $0x560] sm:$0xff]  ;;  %v432_v62 = vld [vmem:[#allocation7 + $0x610] sm:$0xff] }
 0x126   :  { %1180 = vmatprep.subr.bf16.mxu1 %v1179_v19  ;;  %v320_v19 = vld [vmem:[#allocation7 + $0x290] sm:$0xff]  ;;  %v1199_v21 = vpack.c.bf16 %v343_v14, %v337_v12  ;;  %v375_v12 = vld [vmem:[#allocation7 + $0x448] sm:$0xff]  ;;  %v381_v14 = vld [vmem:[#allocation7 + $0x478] sm:$0xff] }
 0x127   :  { %674 = vmatmul.mubr.f32.gmra.mrb[8].mxu0 %v1601_v26  ;;  %v438_v63 = vld [vmem:[#allocation7 + $0x640] sm:$0xff] }
 0x128   :  { %1270 = vmatpush1.bf16.msra.mxu0 %v1269_v25  ;;  %898 = vmatprep.mubr.f32.mxu0 %v1584_v51  ;;  %v1189_v51 = vpack.c.bf16 %v306_v45, %v300_v43  ;;  %v349_v25 = vld [vmem:[#allocation7 + $0x378] sm:$0xff]  ;;  %v338_v43 = vld [vmem:[#allocation7 + $0x320] sm:$0xff]  ;;  %v360_v45 = vld [vmem:[#allocation7 + $0x3d0] sm:$0xff] }
 0x129   :  { %1182 = vmatpush1.bf16.msra.mxu1 %v1181_v27  ;;  %1272 = vmatprep.subr.bf16.mxu0 %v1271_v28  ;;  %v355_v27 = vld [vmem:[#allocation7 + $0x3a8] sm:$0xff]  ;;  %v1289_v28 = vpack.c.bf16 %v320_v19, %v314_v18  ;;  %v1209_v54 = vpack.c.bf16 %v366_v47, %v360_v45  ;;  %v1217_v18 = vpack.c.bf16 %v390_v11, %v384_v9  ;;  %v398_v45 = vld [vmem:[#allocation7 + $0x500] sm:$0xff]  ;;  %v420_v47 = vld [vmem:[#allocation7 + $0x5b0] sm:$0xff] }
 0x12a   :  { %1184 = vmatprep.subr.bf16.mxu1 %v1183_v32  ;;  %v332_v32 = vld [vmem:[#allocation7 + $0x2f0] sm:$0xff]  ;;  %v1203_v34 = vpack.c.bf16 %v355_v27, %v349_v25  ;;  %v1307_v19 = vpack.c.bf16 %v381_v14, %v375_v12  ;;  %v387_v25 = vld [vmem:[#allocation7 + $0x4a8] sm:$0xff]  ;;  %v393_v27 = vld [vmem:[#allocation7 + $0x4d8] sm:$0xff] }
 0x12b   :  { %v428_v9 = vld [vmem:[#allocation7 + $0x5f0] sm:$0xff]  ;;  %v450_v14 = vld [vmem:[#allocation7 + $0x6a0] sm:$0xff] }
 0x12c   :  { %1274 = vmatpush1.bf16.msra.mxu0 %v1273_v38  ;;  %v361_v38 = vld [vmem:[#allocation7 + $0x3d8] sm:$0xff] }
 0x12d   :  { %1186 = vmatpush1.bf16.msra.mxu1 %v1185_v39  ;;  %1276 = vmatprep.subr.bf16.mxu0 %v1275_v40  ;;  %v367_v39 = vld [vmem:[#allocation7 + $0x408] sm:$0xff]  ;;  %v1293_v40 = vpack.c.bf16 %v332_v32, %v326_v31  ;;  %v1221_v31 = vpack.c.bf16 %v402_v24, %v396_v22  ;;  %v1311_v32 = vpack.c.bf16 %v393_v27, %v387_v25  ;;  %v434_v22 = vld [vmem:[#allocation7 + $0x620] sm:$0xff]  ;;  %v456_v24 = vld [vmem:[#allocation7 + $0x6d0] sm:$0xff] }
 0x12e   :  { %1188 = vmatprep.subr.bf16.mxu1 %v1187_v44  ;;  %v344_v44 = vld [vmem:[#allocation7 + $0x350] sm:$0xff]  ;;  %v1207_v46 = vpack.c.bf16 %v367_v39, %v361_v38  ;;  %v399_v38 = vld [vmem:[#allocation7 + $0x508] sm:$0xff]  ;;  %v405_v39 = vld [vmem:[#allocation7 + $0x538] sm:$0xff] }
 0x12f   :  { %v462_v27 = vld [vmem:[#allocation7 + $0x700] sm:$0xff] }
 0x130   :  { %1278 = vmatpush1.bf16.msra.mxu0 %v1277_v50  ;;  %v373_v50 = vld [vmem:[#allocation7 + $0x438] sm:$0xff] }
 0x131   :  { %1190 = vmatpush1.bf16.msra.mxu1 %v1189_v51  ;;  %1280 = vmatprep.subr.bf16.mxu0 %v1279_v52  ;;  %v379_v51 = vld [vmem:[#allocation7 + $0x468] sm:$0xff]  ;;  %v1297_v52 = vpack.c.bf16 %v344_v44, %v338_v43  ;;  %v1225_v43 = vpack.c.bf16 %v414_v37, %v408_v35  ;;  %v1315_v44 = vpack.c.bf16 %v405_v39, %v399_v38  ;;  %v446_v35 = vld [vmem:[#allocation7 + $0x680] sm:$0xff]  ;;  %v468_v37 = vld [vmem:[#allocation7 + $0x730] sm:$0xff] }
 0x132   :  { %1192 = vmatprep.subr.bf16.mxu1 %v1191_v57  ;;  %v356_v57 = vld [vmem:[#allocation7 + $0x3b0] sm:$0xff]  ;;  %v1211_v59 = vpack.c.bf16 %v379_v51, %v373_v50  ;;  %v411_v50 = vld [vmem:[#allocation7 + $0x568] sm:$0xff]  ;;  %v417_v51 = vld [vmem:[#allocation7 + $0x598] sm:$0xff] }
 0x133   :  { %v474_v39 = vld [vmem:[#allocation7 + $0x760] sm:$0xff] }
 0x134   :  { %1282 = vmatpush1.bf16.msra.mxu0 %v1281_v1  ;;  %v385_v1 = vld [vmem:[#allocation7 + $0x498] sm:$0xff] }
 0x135   :  { %1194 = vmatpush1.bf16.msra.mxu1 %v1193_v2  ;;  %1284 = vmatprep.subr.bf16.mxu0 %v1283_v4  ;;  %v391_v2 = vld [vmem:[#allocation7 + $0x4c8] sm:$0xff]  ;;  %v1301_v4 = vpack.c.bf16 %v356_v57, %v350_v56  ;;  %v1229_v56 = vpack.c.bf16 %v426_v49, %v420_v47  ;;  %v1319_v57 = vpack.c.bf16 %v417_v51, %v411_v50  ;;  %v458_v47 = vld [vmem:[#allocation7 + $0x6e0] sm:$0xff]  ;;  %v480_v49 = vld [vmem:[#allocation7 + $0x790] sm:$0xff] }
 0x136   :  { %1196 = vmatprep.subr.bf16.mxu1 %v1195_v8  ;;  %v368_v8 = vld [vmem:[#allocation7 + $0x410] sm:$0xff]  ;;  %v1215_v10 = vpack.c.bf16 %v391_v2, %v385_v1  ;;  %v423_v1 = vld [vmem:[#allocation7 + $0x5c8] sm:$0xff]  ;;  %v429_v2 = vld [vmem:[#allocation7 + $0x5f8] sm:$0xff] }
 0x137   :  { %v1323_v11 = vpack.c.bf16 %v429_v2, %v423_v1  ;;  %v486_v51 = vld [vmem:[#allocation7 + $0x7c0] sm:$0xff]  ;;  %v483_v1 = vld [vmem:[#allocation7 + $0x7a8] sm:$0xff]  ;;  %v489_v2 = vld [vmem:[#allocation7 + $0x7d8] sm:$0xff] }
 0x138   :  { %1286 = vmatpush1.bf16.msra.mxu0 %v1285_v15  ;;  %v397_v15 = vld [vmem:[#allocation7 + $0x4f8] sm:$0xff] }
 0x139   :  { %1198 = vmatpush1.bf16.msra.mxu1 %v1197_v16  ;;  %1288 = vmatprep.subr.bf16.mxu0 %v1287_v17  ;;  %v403_v16 = vld [vmem:[#allocation7 + $0x528] sm:$0xff]  ;;  %v1305_v17 = vpack.c.bf16 %v368_v8, %v362_v7  ;;  %v1233_v7 = vpack.c.bf16 %v438_v63, %v432_v62  ;;  %v422_v8 = vld [vmem:[#allocation7 + $0x5c0] sm:$0xff] }
 0x13a   :  { %1200 = vmatprep.subr.bf16.mxu1 %v1199_v21  ;;  %v380_v21 = vld [vmem:[#allocation7 + $0x470] sm:$0xff]  ;;  %v1219_v23 = vpack.c.bf16 %v403_v16, %v397_v15  ;;  %v435_v15 = vld [vmem:[#allocation7 + $0x628] sm:$0xff]  ;;  %v441_v16 = vld [vmem:[#allocation7 + $0x658] sm:$0xff] }
 0x13b   :  { %v498_v63 = vld [vmem:[#allocation7 + $0x820] sm:$0xff] }
 0x13c   :  { %1290 = vmatpush1.bf16.msra.mxu0 %v1289_v28  ;;  %v409_v28 = vld [vmem:[#allocation7 + $0x558] sm:$0xff] }
 0x13d   :  { %1202 = vmatpush1.bf16.msra.mxu1 %v1201_v29  ;;  %1292 = vmatprep.subr.bf16.mxu0 %v1291_v30  ;;  %v415_v29 = vld [vmem:[#allocation7 + $0x588] sm:$0xff]  ;;  %v1309_v30 = vpack.c.bf16 %v380_v21, %v374_v20  ;;  %v1327_v21 = vpack.c.bf16 %v441_v16, %v435_v15  ;;  %v501_v15 = vld [vmem:[#allocation7 + $0x838] sm:$0xff] }
 0x13e   :  { %1204 = vmatprep.subr.bf16.mxu1 %v1203_v34  ;;  %v392_v34 = vld [vmem:[#allocation7 + $0x4d0] sm:$0xff]  ;;  %v1223_v36 = vpack.c.bf16 %v415_v29, %v409_v28  ;;  %v447_v28 = vld [vmem:[#allocation7 + $0x688] sm:$0xff]  ;;  %v453_v29 = vld [vmem:[#allocation7 + $0x6b8] sm:$0xff] }
 0x13f   :  { %v517_v16 = vld [vmem:[#allocation7 + $0x8b8] sm:$0xff] }
 0x140   :  { %1294 = vmatpush1.bf16.msra.mxu0 %v1293_v40  ;;  %v421_v40 = vld [vmem:[#allocation7 + $0x5b8] sm:$0xff] }
 0x141   :  { %1206 = vmatpush1.bf16.msra.mxu1 %v1205_v41  ;;  %1296 = vmatprep.subr.bf16.mxu0 %v1295_v42  ;;  %v427_v41 = vld [vmem:[#allocation7 + $0x5e8] sm:$0xff]  ;;  %v1313_v42 = vpack.c.bf16 %v392_v34, %v386_v33  ;;  %v1241_v33 = vpack.c.bf16 %v462_v27, %v456_v24  ;;  %v1331_v34 = vpack.c.bf16 %v453_v29, %v447_v28  ;;  %v513_v28 = vld [vmem:[#allocation7 + $0x898] sm:$0xff] }
 0x142   :  { %1208 = vmatprep.subr.bf16.mxu1 %v1207_v46  ;;  %v404_v46 = vld [vmem:[#allocation7 + $0x530] sm:$0xff]  ;;  %v1227_v48 = vpack.c.bf16 %v427_v41, %v421_v40  ;;  %v459_v40 = vld [vmem:[#allocation7 + $0x6e8] sm:$0xff]  ;;  %v465_v41 = vld [vmem:[#allocation7 + $0x718] sm:$0xff] }
 0x143   :  { %v507_v27 = vld [vmem:[#allocation7 + $0x868] sm:$0xff] }
 0x144   :  { %1298 = vmatpush1.bf16.msra.mxu0 %v1297_v52  ;;  %v433_v52 = vld [vmem:[#allocation7 + $0x618] sm:$0xff] }
 0x145   :  { %1210 = vmatpush1.bf16.msra.mxu1 %v1209_v54  ;;  %1300 = vmatprep.subr.bf16.mxu0 %v1299_v55  ;;  %v439_v54 = vld [vmem:[#allocation7 + $0x648] sm:$0xff]  ;;  %v1317_v55 = vpack.c.bf16 %v404_v46, %v398_v45  ;;  %v1245_v45 = vpack.c.bf16 %v474_v39, %v468_v37  ;;  %v1335_v46 = vpack.c.bf16 %v465_v41, %v459_v40  ;;  %v524_v39 = vld [vmem:[#allocation7 + $0x8f0] sm:$0xff] }
 0x146   :  { %1212 = vmatprep.subr.bf16.mxu1 %v1211_v59  ;;  %v416_v59 = vld [vmem:[#allocation7 + $0x590] sm:$0xff]  ;;  %v1231_v60 = vpack.c.bf16 %v439_v54, %v433_v52  ;;  %v471_v52 = vld [vmem:[#allocation7 + $0x748] sm:$0xff]  ;;  %v477_v54 = vld [vmem:[#allocation7 + $0x778] sm:$0xff] }
 0x148   :  { %1302 = vmatpush1.bf16.msra.mxu0 %v1301_v4  ;;  %v445_v4 = vld [vmem:[#allocation7 + $0x678] sm:$0xff] }
 0x149   :  { %1214 = vmatpush1.bf16.msra.mxu1 %v1213_v5  ;;  %1304 = vmatprep.subr.bf16.mxu0 %v1303_v6  ;;  %v451_v5 = vld [vmem:[#allocation7 + $0x6a8] sm:$0xff]  ;;  %v1321_v6 = vpack.c.bf16 %v416_v59, %v410_v58  ;;  %v470_v58 = vld [vmem:[#allocation7 + $0x740] sm:$0xff]  ;;  %v476_v59 = vld [vmem:[#allocation7 + $0x770] sm:$0xff] }
 0x14a   :  { %1216 = vmatprep.subr.bf16.mxu1 %v1215_v10  ;;  %v444_v10 = vld [vmem:[#allocation7 + $0x670] sm:$0xff]  ;;  %v1235_v12 = vpack.c.bf16 %v451_v5, %v445_v4  ;;  %v505_v4 = vld [vmem:[#allocation7 + $0x858] sm:$0xff]  ;;  %v1341_v5 = vpack.c.bf16 %v476_v59, %v470_v58 }
 0x14b   :  { %v1237_v20 = vpack.c.bf16 %v450_v14, %v444_v10  ;;  %v504_v10 = vld [vmem:[#allocation7 + $0x850] sm:$0xff]  ;;  %v495_v14 = vld [vmem:[#allocation7 + $0x808] sm:$0xff] }
 0x14c   :  { %1306 = vmatpush1.bf16.msra.mxu0 %v1305_v17  ;;  %v457_v17 = vld [vmem:[#allocation7 + $0x6d8] sm:$0xff] }
 0x14d   :  { %1218 = vmatpush1.bf16.msra.mxu1 %v1217_v18  ;;  %1308 = vmatprep.subr.bf16.mxu0 %v1307_v19  ;;  %v463_v18 = vld [vmem:[#allocation7 + $0x708] sm:$0xff]  ;;  %v1325_v19 = vpack.c.bf16 %v428_v9, %v422_v8  ;;  %v482_v8 = vld [vmem:[#allocation7 + $0x7a0] sm:$0xff]  ;;  %v488_v9 = vld [vmem:[#allocation7 + $0x7d0] sm:$0xff] }
 0x14e   :  { %1220 = vmatprep.subr.bf16.mxu1 %v1219_v23  ;;  %v440_v23 = vld [vmem:[#allocation7 + $0x650] sm:$0xff]  ;;  %v1239_v25 = vpack.c.bf16 %v463_v18, %v457_v17  ;;  %v523_v17 = vld [vmem:[#allocation7 + $0x8e8] sm:$0xff]  ;;  %v1345_v18 = vpack.c.bf16 %v488_v9, %v482_v8 }
 0x14f   :  { %v1259_v24 = vpack.c.bf16 %v523_v17, %v517_v16 }
 0x150   :  { %1310 = vmatpush1.bf16.msra.mxu0 %v1309_v30  ;;  %v469_v30 = vld [vmem:[#allocation7 + $0x738] sm:$0xff] }
 0x151   :  { %1222 = vmatpush1.bf16.msra.mxu1 %v1221_v31  ;;  %1312 = vmatprep.subr.bf16.mxu0 %v1311_v32  ;;  %v475_v31 = vld [vmem:[#allocation7 + $0x768] sm:$0xff]  ;;  %v1329_v32 = vpack.c.bf16 %v440_v23, %v434_v22  ;;  %v500_v22 = vld [vmem:[#allocation7 + $0x830] sm:$0xff] }
 0x152   :  { %1224 = vmatprep.subr.bf16.mxu1 %v1223_v36  ;;  %v452_v36 = vld [vmem:[#allocation7 + $0x6b0] sm:$0xff]  ;;  %v1243_v38 = vpack.c.bf16 %v475_v31, %v469_v30  ;;  %v1351_v31 = vpack.c.bf16 %v513_v28, %v507_v27 }
 0x153   :  { %v516_v23 = vld [vmem:[#allocation7 + $0x8b0] sm:$0xff] }
 0x154   :  { %1314 = vmatpush1.bf16.msra.mxu0 %v1313_v42  ;;  %v481_v42 = vld [vmem:[#allocation7 + $0x798] sm:$0xff] }
 0x155   :  { %1226 = vmatpush1.bf16.msra.mxu1 %v1225_v43  ;;  %1316 = vmatprep.subr.bf16.mxu0 %v1315_v44  ;;  %v487_v43 = vld [vmem:[#allocation7 + $0x7c8] sm:$0xff]  ;;  %v1333_v44 = vpack.c.bf16 %v452_v36, %v446_v35  ;;  %v525_v35 = vld [vmem:[#allocation7 + $0x8f8] sm:$0xff] }
 0x156   :  { %1228 = vmatprep.subr.bf16.mxu1 %v1227_v48  ;;  %v464_v48 = vld [vmem:[#allocation7 + $0x710] sm:$0xff]  ;;  %v1247_v50 = vpack.c.bf16 %v487_v43, %v481_v42 }
 0x158   :  { %1318 = vmatpush1.bf16.msra.mxu0 %v1317_v55  ;;  %v499_v55 = vld [vmem:[#allocation7 + $0x828] sm:$0xff] }
 0x159   :  { %1230 = vmatpush1.bf16.msra.mxu1 %v1229_v56  ;;  %1320 = vmatprep.subr.bf16.mxu0 %v1319_v57  ;;  %v1249_v56 = vpack.c.bf16 %v486_v51, %v480_v49  ;;  %v1339_v57 = vpack.c.bf16 %v477_v54, %v471_v52 }
 0x15a   :  { %1232 = vmatprep.subr.bf16.mxu1 %v1231_v60  ;;  %v492_v60 = vld [vmem:[#allocation7 + $0x7f0] sm:$0xff] }
 0x15c   :  { %745 = vmatmul.mubr.f32.vlgmr.msra.gmra.mrb[4].mxu1 %v1586_v53  ;;  %1322 = vmatpush1.bf16.msra.mxu0 %v1321_v6  ;;  %v1253_v6 = vpack.c.bf16 %v498_v63, %v492_v60 }
 0x15d   :  { %750 = vmatprep.mubr.f32.mxu1 %v1590_v61  ;;  %1234 = vmatpush1.bf16.msra.mxu1 %v1233_v7  ;;  %v1343_v7 = vpack.c.bf16 %v489_v2, %v483_v1 }
 0x15e   :  { %1324 = vmatprep.subr.bf16.mxu0 %v1323_v11  ;;  %1236 = vmatprep.subr.bf16.mxu1 %v1235_v12  ;;  %v510_v12 = vld [vmem:[#allocation7 + $0x880] sm:$0xff] }
 0x160   :  { %751 = vmatmul.mubr.f32.gmra.mrb[6].mxu1 %v1592_v3  ;;  %1326 = vmatpush1.bf16.msra.mxu0 %v1325_v19  ;;  %v1257_v19 = vpack.c.bf16 %v510_v12, %v504_v10 }
 0x161   :  { %1238 = vmatpush1.bf16.msra.mxu1 %v1237_v20  ;;  %1328 = vmatprep.subr.bf16.mxu0 %v1327_v21  ;;  %v1347_v20 = vpack.c.bf16 %v501_v15, %v495_v14  ;;  %v494_v21 = vld [vmem:[#allocation7 + $0x800] sm:$0xff] }
 0x162   :  { %1240 = vmatprep.subr.bf16.mxu1 %v1239_v25  ;;  %821 = vmatprep.mubr.f32.mxu1 %v1510_v0  ;;  %v522_v25 = vld [vmem:[#allocation7 + $0x8e0] sm:$0xff]  ;;  %v1349_v29 = vpack.c.bf16 %v500_v22, %v494_v21 }
 0x163   :  { %899 = vmatmul.mubr.f32.vlgmr.msra.gmra.mrb[10].mxu0 %v1586_v53  ;;  %v493_v53 = vld [vmem:[#allocation7 + $0x7f8] sm:$0xff]  ;;  %v1261_v30 = vpack.c.bf16 %v522_v25, %v516_v23 }
 0x164   :  { %904 = vmatprep.mubr.f32.mxu0 %v1590_v61  ;;  %1330 = vmatpush1.bf16.msra.mxu0 %v1329_v32  ;;  %v1337_v61 = vpack.c.bf16 %v464_v48, %v458_v47  ;;  %v1251_v62 = vpack.c.bf16 %v499_v55, %v493_v53  ;;  %v506_v32 = vld [vmem:[#allocation7 + $0x860] sm:$0xff] }
 0x165   :  { %1242 = vmatpush1.bf16.msra.mxu1 %v1241_v33  ;;  %1332 = vmatprep.subr.bf16.mxu0 %v1331_v34  ;;  %v512_v33 = vld [vmem:[#allocation7 + $0x890] sm:$0xff]  ;;  %v519_v34 = vld [vmem:[#allocation7 + $0x8c8] sm:$0xff] }
 0x166   :  { %1244 = vmatprep.subr.bf16.mxu1 %v1243_v38  ;;  %v1353_v36 = vpack.c.bf16 %v512_v33, %v506_v32  ;;  %v1355_v37 = vpack.c.bf16 %v525_v35, %v519_v34  ;;  %v518_v38 = vld [vmem:[#allocation7 + $0x8c0] sm:$0xff] }
 0x167   :  { %905 = vmatmul.mubr.f32.gmra.mrb[12].mxu0 %v1592_v3  ;;  %v511_v3 = vld [vmem:[#allocation7 + $0x888] sm:$0xff]  ;;  %v1357_v40 = vpack.c.bf16 %v524_v39, %v518_v38 }
 0x168   :  { %1334 = vmatpush1.bf16.msra.mxu0 %v1333_v44  ;;  %975 = vmatprep.mubr.f32.mxu0 %v1510_v0  ;;  %v1255_v11 = vpack.c.bf16 %v511_v3, %v505_v4 }
 0x169   :  { %1246 = vmatpush1.bf16.msra.mxu1 %v1245_v45  ;;  %1336 = vmatprep.subr.bf16.mxu0 %v1335_v46 }
 0x16a   :  { %1248 = vmatprep.subr.bf16.mxu1 %v1247_v50 }
 0x16c   :  { %1338 = vmatpush1.bf16.msra.mxu0 %v1337_v61 }
 0x16d   :  { %1250 = vmatpush1.bf16.msra.mxu1 %v1249_v56  ;;  %1340 = vmatprep.subr.bf16.mxu0 %v1339_v57 }
 0x16e   :  { %1252 = vmatprep.subr.bf16.mxu1 %v1251_v62 }
 0x170   :  { %1342 = vmatpush1.bf16.msra.mxu0 %v1341_v5 }
 0x171   :  { %1254 = vmatpush1.bf16.msra.mxu1 %v1253_v6  ;;  %1344 = vmatprep.subr.bf16.mxu0 %v1343_v7 }
 0x172   :  { %1256 = vmatprep.subr.bf16.mxu1 %v1255_v11 }
 0x174   :  { %1346 = vmatpush1.bf16.msra.mxu0 %v1345_v18 }
 0x175   :  { %1258 = vmatpush1.bf16.msra.mxu1 %v1257_v19  ;;  %1348 = vmatprep.subr.bf16.mxu0 %v1347_v20 }
 0x176   :  { %1260 = vmatprep.subr.bf16.mxu1 %v1259_v24 }
 0x178   :  { %1350 = vmatpush1.bf16.msra.mxu0 %v1349_v29 }
 0x179   :  { %1262 = vmatpush1.bf16.msra.mxu1 %v1261_v30  ;;  %1352 = vmatprep.subr.bf16.mxu0 %v1351_v31 }
 0x17c   :  { %822 = vmatmul.mubr.f32.vlgmr.msra.gmra.mrb[4].mxu1 %v1596_v13  ;;  %1354 = vmatpush1.bf16.msra.mxu0 %v1353_v36 }
 0x17d   :  { %827 = vmatprep.mubr.f32.mxu1 %v1510_v0  ;;  %1356 = vmatprep.subr.bf16.mxu0 %v1355_v37 }
 0x180   :  { %828 = vmatmul.mubr.f32.gmra.mrb[6].mxu1 %v1601_v26  ;;  %1358 = vmatpush1.bf16.msra.mxu0 %v1357_v40 }
 0x183   :  { %976 = vmatmul.mubr.f32.vlgmr.msra.gmra.mrb[10].mxu0 %v1596_v13 }
 0x184   :  { %981 = vmatprep.mubr.f32.mxu0 %v1510_v0 }
 0x187   :  { %982 = vmatmul.mubr.f32.gmra.mrb[12].mxu0 %v1601_v26 }
 0x1ef   :  { %v592_v41 = vpop.f32.mrb[0].mxu1 }
 0x1f0   :  { %v594_v42 = vpop.f32.mrb[1].mxu1 }
 0x1f3   :  { %v598_v43 = vpop.f32.mrb[2].mxu1 }
 0x1f4   :  { %v600_v44 = vpop.f32.mrb[3].mxu1 }
 0x1f6   :  { %v669_v45 = vpop.f32.mrb[6].mxu0 }
 0x1f7   :  { %v670_v46 = vadd.f32 %v669_v45, %v592_v41  ;;  %v671_v47 = vpop.f32.mrb[7].mxu0 }
 0x1f8   :  { %v672_v48 = vadd.f32 %v671_v47, %v594_v42 }
 0x1f9   :  { %988 = vst [vmem:[#allocation8] sm:$0xff] %v670_v46 }
 0x1fa   :  { %989 = vst [vmem:[#allocation8 + $0x8] sm:$0xff] %v672_v48  ;;  %v675_v49 = vpop.f32.mrb[8].mxu0 }
 0x1fb   :  { %v676_v50 = vadd.f32 %v675_v49, %v598_v43  ;;  %v677_v51 = vpop.f32.mrb[9].mxu0 }
 0x1fc   :  { %v678_v52 = vadd.f32 %v677_v51, %v600_v44 }
 0x1fd   :  { %991 = vst [vmem:[#allocation8 + $0x18] sm:$0xff] %v676_v50 }
 0x1fe   :  { %992 = vst [vmem:[#allocation8 + $0x20] sm:$0xff] %v678_v52 }
 0x24f   :  { %v823_v13 = vpop.f32.mrb[4].mxu1 }
 0x250   :  { %990 = vst [vmem:[#allocation8 + $0x10] sm:$0xff] %v823_v13  ;;  %v825_v0 = vpop.f32.mrb[5].mxu1 }
 0x251   :  { %994 = vst [vmem:[#allocation9] sm:$0xff] %v825_v0 }
 0x253   :  { %v829_v26 = vpop.f32.mrb[6].mxu1 }
 0x254   :  { %993 = vst [vmem:[#allocation8 + $0x28] sm:$0xff] %v829_v26  ;;  %v831_v54 = vpop.f32.mrb[7].mxu1 }
 0x255   :  { %997 = vst [vmem:[#allocation9 + $0x18] sm:$0xff] %v831_v54 }
 0x256   :  { %1460 = shalt.err (!%p1457_p0)
}
 0x257   :  { %s1461_s9 = scalar_lea.hbm %s1652_s3, 768 }
 0x258   :  { %p1462_p1 = scmp.ne.s32.totalorder %s1652_s3, %s1461_s9  ;;  %p1465_p2 = scmp.lt.u32.totalorder %s1461_s9, %s1652_s3 }
 0x25a   :  { %p1467_p3 = pnand %p1465_p2, %p1462_p1 }
 0x25c   :  { %1470 = shalt.err (!%p1467_p3)
}
 0x25d   :  { %1011 = dma.vmem_to_hbm [thread:$0]  %s1006_s5, 768, %s1652_s3, [#allocation4], %s1502_s25, %s1502_s25, %s1503_s26   ;;  %v977_v53 = vpop.f32.mrb[10].mxu0 }
 0x25e   :  { %995 = vst [vmem:[#allocation9 + $0x8] sm:$0xff] %v977_v53  ;;  %v979_v55 = vpop.f32.mrb[11].mxu0  ;;  %s1512_s15 = smov [#allocation9]  }
 0x25f   :  { %s1017_s16 = sshll.u32 %s1512_s15, 4  ;;  %996 = vst [vmem:[#allocation9 + $0x10] sm:$0xff] %v979_v55  ;;  %v983_v61 = vpop.f32.mrb[12].mxu0  ;;  %s1018_s16 = int_to_ptr.vmem [resolvable:$true] %s1017_s16 }
 0x260   :  { %998 = vst [vmem:[#allocation9 + $0x20] sm:$0xff] %v983_v61  ;;  %v985_v56 = vpop.f32.mrb[13].mxu0  ;;  %s1471_s17 = scalar_lea.vmem %s1018_s16, 768  ;;  %p1476_p5 = scmp.lt.s32.totalorder %s1018_s16, %s1018_s16 }
 0x261   :  { %999 = vst [vmem:[#allocation9 + $0x28] sm:$0xff] %v985_v56  ;;  %p1472_p4 = scmp.ne.s32.totalorder %s1018_s16, %s1471_s17  ;;  %p1477_p6 = scmp.lt.s32.totalorder %s1471_s17, %s1471_s17 }
 0x263   :  { %p1478_p7 = por %p1477_p6, %p1476_p5 }
 0x265   :  { %p1479_p8 = pnand %p1478_p7, %p1472_p4 }
 0x267   :  { %1482 = shalt.err (!%p1479_p8)
}
 0x268   :  { %s1483_s19 = scalar_lea.hbm %s1653_s4, 768 }
 0x269   :  { %p1484_p9 = scmp.ne.s32.totalorder %s1653_s4, %s1483_s19  ;;  %p1487_p10 = scmp.lt.u32.totalorder %s1483_s19, %s1653_s4 }
 0x26b   :  { %p1489_p11 = pnand %p1487_p10, %p1484_p9 }
 0x26d   :  { %1492 = shalt.err (!%p1489_p11)
}
 0x26e   :  { %1023 = dma.vmem_to_hbm [thread:$0]  %s1018_s16, 768, %s1653_s4, [#allocation10], %s1502_s25, %s1502_s25, %s1503_s26  }
 0x26f   :  { %1497 = dma.done.wait [#allocation4], 768  }
 0x270   :  { %1498 = vsyncadd [#allocation4], 4294966528 }
 0x271   :  { %1499 = dma.done.wait [#allocation10], 768  }
 0x272   :  { %1500 = vsyncadd [#allocation10], 4294966528 }
 0x273   :  { %1030 = vsyncpa [#allocation3], 1 }
 0x274   :  { %1031 = vsyncpa [#allocation6], 1 }
 0x275   :  { %1032 = vsyncpa [#allocation4], 1 }
 0x276   :  { %1033 = vsyncpa [#allocation10], 1 }

</bundles_post_ra>
